<compile_context>
chip_gen: v7x
topology: tpu7x:2x2x1
jax: 0.10.0
libtpu: 0.0.40
codegen_flags: <defaults>
</compile_context>

<pallas_src>
import functools

import jax
import jax.numpy as jnp
from jax.experimental import pallas as pl
from jax.experimental.pallas import tpu as pltpu


def simple_ann_kernel(x_ref, w1t_ref, b1_ref, w2c_ref, b2_ref, oT_ref):
    # x_ref:(TB, IN)  w1t_ref:(HID, IN)  b1_ref:(HID, 1)  w2c_ref:(HID, 1)  b2_ref:(1, 1)
    # Layer 1 on the MXU; contract the IN axis of both operands so the natively
    # laid-out x block needs no relayout:  (HID, IN) x (TB, IN)^T -> (HID, TB).
    hT = jax.lax.dot_general(
        w1t_ref[...], x_ref[...],
        dimension_numbers=(((1,), (1,)), ((), ())),
        preferred_element_type=jnp.float32,
    )                                                       # (HID, TB), batch on lanes
    hT = jnp.maximum(hT + b1_ref[...], 0.0)                 # bias + ReLU on the VPU
    # Layer 2 (32 -> 1) off the MXU: VPU multiply + XLU sublane reduce.
    yT = jnp.sum(hT * w2c_ref[...], axis=0, keepdims=True) + b2_ref[...]   # (1, TB)
    # Exact sigmoid: exp on the EUP, exact reciprocal -> tight f32 accuracy.
    oT_ref[...] = pl.reciprocal(1.0 + jnp.exp(-yT), approx=False)


@functools.partial(jax.jit, static_argnames=("tb",))
def _simple_ann_impl(x, w1, b1, w2, b2, *, tb):
    B, in_f = x.shape
    hid = w1.shape[1]

    # Tiny (<=1 KiB) parameter-layout prep; weights stay resident in VMEM across
    # the grid via constant index maps.
    w1t = w1.T                   # (HID, IN)
    b1c = b1.reshape(hid, 1)     # broadcast along lanes inside the kernel
    w2c = w2.reshape(hid, 1)     # layer-2 weights as a sublane column (VPU/XLU path)
    b2c = b2.reshape(1, 1)

    # Batch tiling.  tb is chosen so it divides B in normal use (see wrapper);
    # for ragged batches prefer a tb that divides B rather than paying this pad.
    Bp = pl.cdiv(B, tb) * tb
    if Bp != B:
        x = jnp.pad(x, ((0, Bp - B), (0, 0)))

    yT = pl.pallas_call(
        simple_ann_kernel,
        out_shape=jax.ShapeDtypeStruct((1, Bp), jnp.float32),
        grid_spec=pltpu.PrefetchScalarGridSpec(
            num_scalar_prefetch=0,
            grid=(Bp // tb,),
            in_specs=[
                pl.BlockSpec((tb, in_f), lambda i: (i, 0)),   # x streamed natively (B, 8)
                pl.BlockSpec((hid, in_f), lambda i: (0, 0)),  # weights/biases resident
                pl.BlockSpec((hid, 1), lambda i: (0, 0)),
                pl.BlockSpec((hid, 1), lambda i: (0, 0)),
                pl.BlockSpec((1, 1), lambda i: (0, 0)),
            ],
            out_specs=pl.BlockSpec((1, tb), lambda i: (0, i)),  # lane-dense output slab
        ),
        compiler_params=pltpu.CompilerParams(
            # Independent batch slabs -> sharded across the 2 TensorCores on v7x;
            # harmless no-op when the grid collapses to one step on v5e/v6e.
            dimension_semantics=("parallel",),
        ),
    )(x, w1t, b1c, w2c, b2c)

    yT = yT if Bp == B else yT[:, :B]
    # Module contract is (B, 1); this reshape is the only remaining layout op.
    return yT.reshape(B, 1)


def simple_ann_forward(x, w1, b1, w2, b2, *, tb=None):
    """x:(B, 8), w1:(8, 32), b1:(32,), w2:(32, 1), b2:(1,) -> (B, 1) float32."""
    B = x.shape[0]
    if tb is None:
        kind = ""
        try:
            kind = jax.devices()[0].device_kind.lower()
        except Exception:  # pragma: no cover - defensive; fall back to single step
            pass
        # v7x has 2 TensorCores -> keep 2 parallel slabs; single-TC chips (v5e/v6e)
        # collapse to one grid step to kill per-step overhead.
        slabs = 2 if ("v7" in kind and B >= 256) else 1
        tb = pl.cdiv(B, slabs)
        tb = pl.cdiv(tb, 128) * 128  # lane-aligned so the output store stays unmasked
    return _simple_ann_impl(x, w1, b1, w2, b2, tb=tb)


def jax_reference(x, w1, b1, w2, b2):
    h = jnp.maximum(x @ w1 + b1, 0.0)
    return jax.nn.sigmoid(h @ w2 + b2)


if __name__ == "__main__":
    key = jax.random.PRNGKey(0)
    kx, k1, k2, k3, k4 = jax.random.split(key, 5)

    B, IN, HID, OUT = 256, 8, 32, 1

    # Deterministic init (mimics PyTorch Linear uniform(-1/sqrt(fan_in), 1/sqrt(fan_in))).
    x = jax.random.normal(kx, (B, IN), dtype=jnp.float32)
    bound1 = 1.0 / jnp.sqrt(IN)
    w1 = jax.random.uniform(k1, (IN, HID), jnp.float32, -bound1, bound1)   # stored [in, out]
    b1 = jax.random.uniform(k2, (HID,), jnp.float32, -bound1, bound1)
    bound2 = 1.0 / jnp.sqrt(HID)
    w2 = jax.random.uniform(k3, (HID, OUT), jnp.float32, -bound2, bound2)  # stored [in, out]
    b2 = jax.random.uniform(k4, (OUT,), jnp.float32, -bound2, bound2)

    out = simple_ann_forward(x, w1, b1, w2, b2)
    out = jax.block_until_ready(out)

    ref = jax_reference(x, w1, b1, w2, b2)
    assert out.shape == (B, OUT), out.shape
    # Exact sigmoid path -> tight f32 tolerance.
    assert jnp.allclose(out, ref, atol=1e-5, rtol=1e-5), float(jnp.max(jnp.abs(out - ref)))

    print("KERNEL_OK")
</pallas_src>

<mosaic_0001>
module attributes {stable_mosaic.version = 11 : i64} {
  func.func @simple_ann_kernel(%arg0: i32, %arg1: memref<256x8xf32, #tpu.memory_space<vmem>>, %arg2: memref<32x8xf32, #tpu.memory_space<vmem>>, %arg3: memref<32x1xf32, #tpu.memory_space<vmem>>, %arg4: memref<32x1xf32, #tpu.memory_space<vmem>>, %arg5: memref<1x1xf32, #tpu.memory_space<vmem>>, %arg6: memref<1x256xf32, #tpu.memory_space<vmem>>) attributes {dimension_semantics = [#tpu.dimension_semantics<parallel>], iteration_bounds = array<i64: 1>, scalar_prefetch = 0 : i64, scratch_operands = 0 : i64, tpu.core_type = #tpu.core_type<tc>, window_params = [{transform_indices = @transform_0, window_bounds = array<i64: 256, 8>}, {pipeline_mode = #tpu.pipeline_mode<synchronous>, transform_indices = @transform_1, window_bounds = array<i64: 32, 8>}, {pipeline_mode = #tpu.pipeline_mode<synchronous>, transform_indices = @transform_2, window_bounds = array<i64: 32, 1>}, {pipeline_mode = #tpu.pipeline_mode<synchronous>, transform_indices = @transform_3, window_bounds = array<i64: 32, 1>}, {pipeline_mode = #tpu.pipeline_mode<synchronous>, transform_indices = @transform_4, window_bounds = array<i64: 1, 1>}, {transform_indices = @transform_5, window_bounds = array<i64: 1, 256>}]} {
    %c0 = arith.constant 0 : index
    %c0_0 = arith.constant 0 : index
    %0 = vector.load %arg2[%c0, %c0_0] : memref<32x8xf32, #tpu.memory_space<vmem>>, vector<32x8xf32>
    %c0_1 = arith.constant 0 : index
    %c0_2 = arith.constant 0 : index
    %1 = vector.load %arg1[%c0_1, %c0_2] : memref<256x8xf32, #tpu.memory_space<vmem>>, vector<256x8xf32>
    %cst = arith.constant dense<0.000000e+00> : vector<32x256xf32>
    %2 = tpu.matmul %0, %1, %cst {dimension_numbers = #tpu.dot_dimension_numbers<[1], [1], [0], [0], [0, 0, 1, 0], [], []>} : vector<32x8xf32>, vector<256x8xf32>, vector<32x256xf32> -> vector<32x256xf32>
    %c0_3 = arith.constant 0 : index
    %c0_4 = arith.constant 0 : index
    %3 = vector.load %arg3[%c0_3, %c0_4] : memref<32x1xf32, #tpu.memory_space<vmem>>, vector<32x1xf32>
    %4 = vector.broadcast %3 : vector<32x1xf32> to vector<32x256xf32>
    %5 = arith.addf %2, %4 : vector<32x256xf32>
    %cst_5 = arith.constant 0.000000e+00 : f32
    %6 = vector.broadcast %cst_5 : f32 to vector<32x256xf32>
    %7 = arith.maximumf %5, %6 : vector<32x256xf32>
    %c0_6 = arith.constant 0 : index
    %c0_7 = arith.constant 0 : index
    %8 = vector.load %arg4[%c0_6, %c0_7] : memref<32x1xf32, #tpu.memory_space<vmem>>, vector<32x1xf32>
    %9 = vector.broadcast %8 : vector<32x1xf32> to vector<32x256xf32>
    %10 = arith.mulf %7, %9 : vector<32x256xf32>
    %cst_8 = arith.constant dense<0.000000e+00> : vector<256xf32>
    %11 = vector.multi_reduction <add>, %10, %cst_8 [0] : vector<32x256xf32> to vector<256xf32>
    %12 = vector.shape_cast %11 : vector<256xf32> to vector<1x256xf32>
    %c0_9 = arith.constant 0 : index
    %c0_10 = arith.constant 0 : index
    %13 = vector.load %arg5[%c0_9, %c0_10] : memref<1x1xf32, #tpu.memory_space<vmem>>, vector<1x1xf32>
    %14 = vector.broadcast %13 : vector<1x1xf32> to vector<1x256xf32>
    %15 = arith.addf %12, %14 : vector<1x256xf32>
    %cst_11 = arith.constant 0.000000e+00 : f32
    %16 = vector.broadcast %cst_11 : f32 to vector<1x256xf32>
    %17 = arith.subf %16, %15 : vector<1x256xf32>
    %18 = math.exp %17 : vector<1x256xf32>
    %cst_12 = arith.constant 1.000000e+00 : f32
    %19 = vector.broadcast %cst_12 : f32 to vector<1x256xf32>
    %20 = arith.addf %19, %18 : vector<1x256xf32>
    %21 = tpu.reciprocal %20 : vector<1x256xf32> -> vector<1x256xf32>
    %c0_13 = arith.constant 0 : index
    %c0_14 = arith.constant 0 : index
    %22 = vector.load %arg6[%c0_13, %c0_14] : memref<1x256xf32, #tpu.memory_space<vmem>>, vector<1x256xf32>
    tpu.vector_store %arg6[%c0_13, %c0_14], %21 {strides = array<i32>} : memref<1x256xf32, #tpu.memory_space<vmem>>, vector<1x256xf32>,
    return
  }
  func.func @transform_0(%arg0: i32) -> (i32, i32) {
    %c0_i32 = arith.constant 0 : i32
    %c0_i32_0 = arith.constant 0 : i32
    return %arg0, %c0_i32 : i32, i32
  }
  func.func @transform_1(%arg0: i32) -> (i32, i32) {
    %c0_i32 = arith.constant 0 : i32
    %c0_i32_0 = arith.constant 0 : i32
    %c0_i32_1 = arith.constant 0 : i32
    return %c0_i32, %c0_i32_0 : i32, i32
  }
  func.func @transform_2(%arg0: i32) -> (i32, i32) {
    %c0_i32 = arith.constant 0 : i32
    %c0_i32_0 = arith.constant 0 : i32
    %c0_i32_1 = arith.constant 0 : i32
    return %c0_i32, %c0_i32_0 : i32, i32
  }
  func.func @transform_3(%arg0: i32) -> (i32, i32) {
    %c0_i32 = arith.constant 0 : i32
    %c0_i32_0 = arith.constant 0 : i32
    %c0_i32_1 = arith.constant 0 : i32
    return %c0_i32, %c0_i32_0 : i32, i32
  }
  func.func @transform_4(%arg0: i32) -> (i32, i32) {
    %c0_i32 = arith.constant 0 : i32
    %c0_i32_0 = arith.constant 0 : i32
    %c0_i32_1 = arith.constant 0 : i32
    return %c0_i32, %c0_i32_0 : i32, i32
  }
  func.func @transform_5(%arg0: i32) -> (i32, i32) {
    %c0_i32 = arith.constant 0 : i32
    %c0_i32_0 = arith.constant 0 : i32
    return %c0_i32, %arg0 : i32, i32
  }
}

</mosaic_0001>

<bundles_post_ra>
// kernel: _simple_ann_impl.1
= control target key start
LH: loop header
LB: loop body
LE: loop exit
PB: predicated region body
PF: predicated region fallthrough
CT: control target
= control target key end

     0   :  { %s841_s0 = inlined_call_operand.vmem [shape: f32[256,8], index: 0, kind: input, shape index: {}]   ;;  %s842_s1 = inlined_call_operand.vmem [shape: f32[32,8], index: 1, kind: input, shape index: {}]   ;;  %s843_s2 = inlined_call_operand.vmem [shape: f32[32,1], index: 2, kind: input, shape index: {}]   ;;  %s844_s3 = inlined_call_operand.vmem [shape: f32[32,1], index: 3, kind: input, shape index: {}]   ;;  %s845_s4 = inlined_call_operand.<no memory space> [shape: f32[1,1], index: 4, kind: input, shape index: {}]   ;;  %s846_s5 = inlined_call_operand.hbm [shape: f32[1,256], index: 5, kind: output, shape index: {}]  }
   0x1   :  { %v10_v0 = vstv %s845_s4 }
   0x2   :  { %11 = vst [vmem:[#allocation2] sm:$0x1] %v10_v0 }
   0x3   :  { %v43_v1 = vld [vmem:[%s841_s0 + $0x80] sm:$0xff]  ;;  %v44_v2 = vld [vmem:[%s841_s0 + $0x88] sm:$0xff]  ;;  %vm83_vm0 = vcmask 64512   ;;  %v45_v7 = vld [vmem:[%s841_s0 + $0x90] sm:$0xff]  ;;  %v575_v8 = vmov 0  }
   0x4   :  { %v27_v3 = vld [vmem:[%s841_s0] sm:$0xff]  ;;  %v474_v4 = vpack.c.bf16 %v44_v2, %v43_v1  ;;  %vm622_vm1 = vmpackc.low %vm83_vm0, %vm83_vm0  ;;  %v28_v6 = vld [vmem:[%s841_s0 + $0x8] sm:$0xff]  ;;  %541 = vset.pattern.permute.xlu0 %v575_v8  ;;  %542 = vset.pattern.permute.xlu1 %v575_v8 }
   0x5   :  { %v477_v9 = vpack.c.bf16 %v28_v6, %v27_v3  ;;  %v46_v10 = vld [vmem:[%s841_s0 + $0x98] sm:$0xff]  ;;  %v29_v12 = vld [vmem:[%s841_s0 + $0x10] sm:$0xff]  ;;  %v47_v14 = vld [vmem:[%s841_s0 + $0xa0] sm:$0xff] }
   0x6   :  { %476 = vmatprep.subr.msk.bf16.mxu0 %vm622_vm1, %v474_v4  ;;  %522 = vmatprep.subr.msk.bf16.mxu1 %vm622_vm1, %v474_v4  ;;  %v480_v11 = vpack.c.bf16 %v46_v10, %v45_v7  ;;  %v30_v13 = vld [vmem:[%s841_s0 + $0x18] sm:$0xff]  ;;  %v48_v15 = vld [vmem:[%s841_s0 + $0xa8] sm:$0xff]  ;;  %v662_v18 = vld [vmem:[%s842_s1] sm:$0xff] }
   0x7   :  { %479 = vmatpush3.bf16.xpose.msk.msra.mxu0 %vm622_vm1, %v477_v9  ;;  %530 = vmatpush3.bf16.xpose.msk.msra.mxu1 %vm622_vm1, %v477_v9  ;;  %v483_v16 = vpack.c.bf16 %v30_v13, %v29_v12  ;;  %v486_v17 = vpack.c.bf16 %v48_v15, %v47_v14  ;;  %v667_v19 = vld [vmem:[%s842_s1 + $0x10] sm:$0xff]  ;;  %v59_v20 = vld [vmem:[%s843_s2] sm:$0xff]  ;;  %v32_v22 = vld [vmem:[%s841_s0 + $0x28] sm:$0xff] }
   0x8   :  { %482 = vmatprep.subr.msk.bf16.mxu0 %vm622_vm1, %v480_v11  ;;  %523 = vmatprep.subr.msk.bf16.mxu1 %vm622_vm1, %v480_v11  ;;  %v31_v21 = vld [vmem:[%s841_s0 + $0x20] sm:$0xff]  ;;  %v61_v23 = vld [vmem:[%s843_s2 + $0x10] sm:$0xff]  ;;  %v50_v25 = vld [vmem:[%s841_s0 + $0xb8] sm:$0xff] }
   0x9   :  { %v49_v24 = vld [vmem:[%s841_s0 + $0xb0] sm:$0xff]  ;;  %466 = vmatprep.mubr.msk.f32.mxu0 %vm83_vm0, %v662_v18  ;;  %470 = vmatprep.mubr.msk.f32.mxu1 %vm83_vm0, %v667_v19 }
   0xa   :  { %65 = vperm.xlu0 %541, %v59_v20   ;;  %75 = vperm.xlu1 %542, %v61_v23  }
   0xf   :  { %485 = vmatpush3.bf16.xpose.msk.msra.mxu0 %vm622_vm1, %v483_v16  ;;  %531 = vmatpush3.bf16.xpose.msk.msra.mxu1 %vm622_vm1, %v483_v16 }
  0x10   :  { %488 = vmatprep.subr.msk.bf16.mxu0 %vm622_vm1, %v486_v17  ;;  %524 = vmatprep.subr.msk.bf16.mxu1 %vm622_vm1, %v486_v17 }
  0x11   :  { %12 = vsyncpa [#allocation4], 0  ;;  %v489_v26 = vpack.c.bf16 %v32_v22, %v31_v21  ;;  %v60_v27 = vld [vmem:[%s843_s2 + $0x8] sm:$0xff]  ;;  %v62_v28 = vld [vmem:[%s843_s2 + $0x18] sm:$0xff]  ;;  %v492_v29 = vpack.c.bf16 %v50_v25, %v49_v24 }
  0x12   :  { %70 = vperm.xlu0 %541, %v60_v27   ;;  %80 = vperm.xlu1 %542, %v62_v28   ;;  %v289_v30 = vld [vmem:[%s844_s3] sm:$0xff]  ;;  %v290_v31 = vld [vmem:[%s844_s3 + $0x8] sm:$0xff]  ;;  %v33_v32 = vld [vmem:[%s841_s0 + $0x30] sm:$0xff] }
  0x13   :  { %v34_v33 = vld [vmem:[%s841_s0 + $0x38] sm:$0xff]  ;;  %v51_v34 = vld [vmem:[%s841_s0 + $0xc0] sm:$0xff]  ;;  %v52_v35 = vld [vmem:[%s841_s0 + $0xc8] sm:$0xff] }
  0x14   :  { %v495_v36 = vpack.c.bf16 %v34_v33, %v33_v32  ;;  %v291_v37 = vld [vmem:[%s844_s3 + $0x10] sm:$0xff]  ;;  %v292_v38 = vld [vmem:[%s844_s3 + $0x18] sm:$0xff]  ;;  %v498_v39 = vpack.c.bf16 %v52_v35, %v51_v34  ;;  %v339_v40 = vld [vmem:[#allocation2] sm:$0x1] }
  0x15   :  { %v35_v41 = vld [vmem:[%s841_s0 + $0x40] sm:$0xff]  ;;  %v36_v42 = vld [vmem:[%s841_s0 + $0x48] sm:$0xff]  ;;  %v53_v43 = vld [vmem:[%s841_s0 + $0xd0] sm:$0xff] }
  0x16   :  { %295 = vperm.xlu0 %541, %v289_v30   ;;  %300 = vperm.xlu1 %542, %v290_v31   ;;  %v54_v44 = vld [vmem:[%s841_s0 + $0xd8] sm:$0xff]  ;;  %v501_v45 = vpack.c.bf16 %v36_v42, %v35_v41  ;;  %v37_v47 = vld [vmem:[%s841_s0 + $0x50] sm:$0xff]  ;;  %v55_v49 = vld [vmem:[%s841_s0 + $0xe0] sm:$0xff] }
  0x17   :  { %491 = vmatpush3.bf16.xpose.msk.msra.mxu0 %vm622_vm1, %v489_v26  ;;  %532 = vmatpush3.bf16.xpose.msk.msra.mxu1 %vm622_vm1, %v489_v26  ;;  %v504_v46 = vpack.c.bf16 %v54_v44, %v53_v43  ;;  %v38_v48 = vld [vmem:[%s841_s0 + $0x58] sm:$0xff]  ;;  %v56_v50 = vld [vmem:[%s841_s0 + $0xe8] sm:$0xff]  ;;  %v39_v53 = vld [vmem:[%s841_s0 + $0x60] sm:$0xff]  ;;  %v345_v44 = vlaneseq }
  0x18   :  { %494 = vmatprep.subr.msk.bf16.mxu0 %vm622_vm1, %v492_v29  ;;  %525 = vmatprep.subr.msk.bf16.mxu1 %vm622_vm1, %v492_v29  ;;  %v507_v51 = vpack.c.bf16 %v38_v48, %v37_v47  ;;  %v510_v52 = vpack.c.bf16 %v56_v50, %v55_v49  ;;  %v40_v54 = vld [vmem:[%s841_s0 + $0x68] sm:$0xff]  ;;  %v57_v55 = vld [vmem:[%s841_s0 + $0xf0] sm:$0xff]  ;;  %v58_v56 = vld [vmem:[%s841_s0 + $0xf8] sm:$0xff] }
  0x19   :  { %v513_v57 = vpack.c.bf16 %v40_v54, %v39_v53  ;;  %v516_v58 = vpack.c.bf16 %v58_v56, %v57_v55  ;;  %v41_v59 = vld [vmem:[%s841_s0 + $0x70] sm:$0xff]  ;;  %v42_v60 = vld [vmem:[%s841_s0 + $0x78] sm:$0xff]  ;;  %v24_v62 = vld [vmem:[%s842_s1 + $0x8] sm:$0xff]  ;;  %v346_v49 = vshrl.u32 %v345_v44, 7  ;;  %s577_s0 = smov [#allocation3]   ;;  %vm381_vm2 = vcmp.lt.s32.totalorder %v345_v44, 256 }
  0x1a   :  { %305 = vperm.xlu0 %541, %v291_v37   ;;  %310 = vperm.xlu1 %542, %v292_v38   ;;  %v519_v61 = vpack.c.bf16 %v42_v60, %v41_v59  ;;  %v26_v63 = vld [vmem:[%s842_s1 + $0x18] sm:$0xff]  ;;  %s390_s1 = sshll.u32 %s577_s0, 4  ;;  %s391_s1 = int_to_ptr.vmem [resolvable:$true] %s390_s1 }
  0x1b   :  { %v347_v54 = vsub.s32 0, %v346_v49  ;;  %s551_s4 = scalar_lea.vmem %s391_s1, 32  ;;  %p556_p1 = scmp.lt.s32.totalorder %s391_s1, %s391_s1 }
  0x1c   :  { %p552_p0 = scmp.ne.s32.totalorder %s391_s1, %s551_s4  ;;  %p557_p2 = scmp.lt.s32.totalorder %s551_s4, %s551_s4 }
  0x1e   :  { %342 = vperm.xlu0 %541, %v339_v40   ;;  %p558_p3 = por %p557_p2, %p556_p1 }
  0x1f   :  { %497 = vmatpush3.bf16.xpose.msk.msra.mxu0 %vm622_vm1, %v495_v36  ;;  %533 = vmatpush3.bf16.xpose.msk.msra.mxu1 %vm622_vm1, %v495_v36 }
  0x20   :  { %500 = vmatprep.subr.msk.bf16.mxu0 %vm622_vm1, %v498_v39  ;;  %526 = vmatprep.subr.msk.bf16.mxu1 %vm622_vm1, %v498_v39  ;;  %p559_p4 = pnand %p558_p3, %p552_p0 }
  0x27   :  { %503 = vmatpush3.bf16.xpose.msk.msra.mxu0 %vm622_vm1, %v501_v45  ;;  %534 = vmatpush3.bf16.xpose.msk.msra.mxu1 %vm622_vm1, %v501_v45 }
  0x28   :  { %506 = vmatprep.subr.msk.bf16.mxu0 %vm622_vm1, %v504_v46  ;;  %527 = vmatprep.subr.msk.bf16.mxu1 %vm622_vm1, %v504_v46 }
  0x2f   :  { %509 = vmatpush3.bf16.xpose.msk.msra.mxu0 %vm622_vm1, %v507_v51  ;;  %535 = vmatpush3.bf16.xpose.msk.msra.mxu1 %vm622_vm1, %v507_v51 }
  0x30   :  { %512 = vmatprep.subr.msk.bf16.mxu0 %vm622_vm1, %v510_v52  ;;  %528 = vmatprep.subr.msk.bf16.mxu1 %vm622_vm1, %v510_v52 }
  0x37   :  { %515 = vmatpush3.bf16.xpose.msk.msra.mxu0 %vm622_vm1, %v513_v57  ;;  %536 = vmatpush3.bf16.xpose.msk.msra.mxu1 %vm622_vm1, %v513_v57 }
  0x38   :  { %518 = vmatprep.subr.msk.bf16.mxu0 %vm622_vm1, %v516_v58  ;;  %529 = vmatprep.subr.msk.bf16.mxu1 %vm622_vm1, %v516_v58 }
  0x3f   :  { %521 = vmatpush3.bf16.xpose.msk.msra.mxu0 %vm622_vm1, %v519_v61  ;;  %537 = vmatpush3.bf16.xpose.msk.msra.mxu1 %vm622_vm1, %v519_v61 }
  0x46   :  { %467 = vmatmul.mubr.msk.f32.vlgmr.msra.gmra.mrb[0].mxu0 %vm83_vm0, %v662_v18  ;;  %471 = vmatmul.mubr.msk.f32.vlgmr.msra.gmra.mrb[0].mxu1 %vm83_vm0, %v667_v19 }
  0x47   :  { %468 = vmatprep.mubr.msk.f32.mxu0 %vm83_vm0, %v24_v62  ;;  %472 = vmatprep.mubr.msk.f32.mxu1 %vm83_vm0, %v26_v63 }
  0x4a   :  { %469 = vmatmul.mubr.msk.f32.gmra.mrb[2].mxu0 %vm83_vm0, %v24_v62  ;;  %473 = vmatmul.mubr.msk.f32.gmra.mrb[2].mxu1 %vm83_vm0, %v26_v63 }
  0x89   :  { %v66_v0 = vpop.permute.xlu0 %65  ;;  %v76_v1 = vpop.permute.xlu1 %75 }
  0x91   :  { %v71_v2 = vpop.permute.xlu0 %70  ;;  %v81_v3 = vpop.permute.xlu1 %80 }
  0x95   :  { %v296_v10 = vpop.permute.xlu0 %295  ;;  %v301_v20 = vpop.permute.xlu1 %300 }
  0x99   :  { %v306_v31 = vpop.permute.xlu0 %305  ;;  %v311_v37 = vpop.permute.xlu1 %310 }
  0x9d   :  { %v343_v56 = vpop.permute.xlu0 %342 }
  0x9e   :  { %v348_v60 = vrot.slane %v343_v56, %v347_v54 }
 0x119   :  { %v258_v4 = vpop.f32.mrb[0].mxu0  ;;  %v270_v5 = vpop.f32.mrb[0].mxu1 }
 0x11a   :  { %v259_v6 = vadd.f32 %v258_v4, %v66_v0  ;;  %v260_v7 = vpop.f32.mrb[1].mxu0  ;;  %v272_v8 = vpop.f32.mrb[1].mxu1  ;;  %v271_v11 = vadd.f32 %v270_v5, %v76_v1 }
 0x11b   :  { %v261_v9 = vadd.f32 %v260_v7, %v66_v0  ;;  %v273_v12 = vadd.f32 %v272_v8, %v76_v1 }
 0x11c   :  { %v281_v15 = vmax.f32 %v259_v6, 0.0  ;;  %v285_v24 = vmax.f32 %v271_v11, 0.0 }
 0x11d   :  { %v264_v13 = vpop.f32.mrb[2].mxu0  ;;  %v276_v14 = vpop.f32.mrb[2].mxu1  ;;  %v282_v21 = vmax.f32 %v261_v9, 0.0  ;;  %v286_v26 = vmax.f32 %v273_v12, 0.0  ;;  %v576_v9 = vmov 1966171168  }
 0x11e   :  { %v265_v16 = vadd.f32 %v264_v13, %v71_v2  ;;  %v277_v17 = vadd.f32 %v276_v14, %v81_v3  ;;  %v266_v18 = vpop.f32.mrb[3].mxu0  ;;  %v278_v19 = vpop.f32.mrb[3].mxu1  ;;  %v313_v28 = vmul.f32 %v296_v10, %v281_v15  ;;  %v317_v35 = vmul.f32 %v306_v31, %v285_v24 }
 0x11f   :  { %v267_v22 = vadd.f32 %v266_v18, %v71_v2  ;;  %v279_v23 = vadd.f32 %v278_v19, %v81_v3  ;;  %v314_v32 = vmul.f32 %v296_v10, %v282_v21  ;;  %v318_v38 = vmul.f32 %v306_v31, %v286_v26 }
 0x120   :  { %v283_v25 = vmax.f32 %v265_v16, 0.0  ;;  %v287_v30 = vmax.f32 %v277_v17, 0.0  ;;  %v365_v10 = vunpack.c.l.s4 %v576_v9 }
 0x121   :  { %v284_v27 = vmax.f32 %v267_v22, 0.0  ;;  %v288_v34 = vmax.f32 %v279_v23, 0.0 }
 0x122   :  { %v315_v29 = vmul.f32 %v301_v20, %v283_v25  ;;  %v319_v40 = vmul.f32 %v311_v37, %v287_v30  ;;  %v366_v11 = vunpack.c.0.s8 %v365_v10 }
 0x123   :  { %v316_v33 = vmul.f32 %v301_v20, %v284_v27  ;;  %v320_v42 = vmul.f32 %v311_v37, %v288_v34 }
 0x124   :  { %v321_v36 = vadd.f32 %v315_v29, %v313_v28  ;;  %v369_v13 = vsub.s32 %v366_v11, %v346_v49 }
 0x125   :  { %v330_v39 = vadd.f32 %v316_v33, %v314_v32 }
 0x126   :  { %v322_v41 = vadd.f32 %v321_v36, %v317_v35 }
 0x127   :  { %v331_v43 = vadd.f32 %v330_v39, %v318_v38 }
 0x128   :  { %v323_v45 = vadd.f32 %v322_v41, %v319_v40 }
 0x129   :  { %v332_v46 = vadd.f32 %v331_v43, %v320_v42 }
 0x12a   :  { %v324_v47 = vrot.slane %v323_v45, 4 }
 0x12b   :  { %v333_v48 = vrot.slane %v332_v46, 4 }
 0x12c   :  { %v325_v50 = vadd.f32 %v324_v47, %v323_v45 }
 0x12d   :  { %v334_v51 = vadd.f32 %v333_v48, %v332_v46 }
 0x12e   :  { %v326_v52 = vrot.slane %v325_v50, 2 }
 0x12f   :  { %v335_v53 = vrot.slane %v334_v51, 2 }
 0x130   :  { %v327_v55 = vadd.f32 %v326_v52, %v325_v50 }
 0x131   :  { %v336_v57 = vadd.f32 %v335_v53, %v334_v51 }
 0x132   :  { %v328_v58 = vrot.slane %v327_v55, 1 }
 0x133   :  { %v337_v59 = vrot.slane %v336_v57, 1 }
 0x134   :  { %v329_v61 = vadd.f32 %v328_v58, %v327_v55 }
 0x135   :  { %v338_v62 = vadd.f32 %v337_v59, %v336_v57 }
 0x136   :  { %v349_v63 = vadd.f32 %v348_v60, %v329_v61 }
 0x137   :  { %v350_v0 = vadd.f32 %v348_v60, %v338_v62 }
 0x138   :  { %v351_v1 = vsub.f32 0.0, %v349_v63 }
 0x139   :  { %v352_v2 = vsub.f32 0.0, %v350_v0 }
 0x13a   :  { %v353_v3 = vmul.f32 1.442695, %v351_v1 }
 0x13b   :  { %v355_v4 = vmul.f32 1.442695, %v352_v2 }
 0x13c   :  { %543 = vpow2.f32 %v353_v3 }
 0x13d   :  { %545 = vpow2.f32 %v355_v4 }
 0x146   :  { %v544_v5 = vpop.eup %543 }
 0x147   :  { %v546_v6 = vpop.eup %545  ;;  %v357_v7 = vadd.f32 1.0, %v544_v5 }
 0x148   :  { %v358_v8 = vadd.f32 1.0, %v546_v6 }
 0x149   :  { %547 = vrcp.f32 %v357_v7 }
 0x14a   :  { %549 = vrcp.f32 %v358_v8 }
 0x153   :  { %v548_v12 = vpop.eup %547 }
 0x154   :  { %v550_v14 = vpop.eup %549 }
 0x155   :  { %v363_v15 = vcombine.low %v548_v12, %v550_v14 }
 0x157   :  { %v370_v16 = vrot.slane %v363_v15, %v369_v13 }
 0x159   :  { %v377_v17 = vrot.slane %v370_v16, %v369_v13 }
 0x15b   :  { %383 = vst.msk [vmem:[#allocation3] sm:$0x3] %vm381_vm2, %v377_v17 }
 0x15c   :  { %562 = shalt.err (!%p559_p4)
}
 0x15d   :  { %s563_s28 = scalar_lea.hbm %s846_s5, 32 }
 0x15e   :  { %p564_p5 = scmp.ne.s32.totalorder %s846_s5, %s563_s28  ;;  %p567_p6 = scmp.lt.u32.totalorder %s563_s28, %s846_s5 }
 0x160   :  { %p569_p7 = pnand %p567_p6, %p564_p5 }
 0x162   :  { %572 = shalt.err (!%p569_p7)
}
 0x163   :  { %393 = dma.vmem_to_hbm [thread:$0]  %s391_s1, 32, %s846_s5, [#allocation4]  }
 0x164   :  { %573 = dma.done.wait [#allocation4], 32  }
 0x165   :  { %574 = vsyncadd [#allocation4], 4294967264 }
 0x166   :  { %397 = vsyncpa [#allocation4], 1 }

</bundles_post_ra>
